<compile_context>
chip_gen: v7x
topology: tpu7x:2x2x1
jax: 0.10.0
libtpu: 0.0.40
codegen_flags: <defaults>
</compile_context>

<pallas_src>
import functools

import jax
import jax.numpy as jnp
import numpy as np
from jax.experimental import pallas as pl
from jax.experimental.pallas import tpu as pltpu


# ----------------------------------------------------------------------------
# Kernel 1: softmax over classes + per-class negated errors / fg masks /
#           per-block fg counts.  Grid (B, pixel-blocks), both "parallel".
# ----------------------------------------------------------------------------
def _softmax_err_kernel(logits_ref, target_ref, neg_err_ref, fg_ref, gts_ref,
                        *, ignore_index):
    x = logits_ref[...]                                   # (C, T) f32
    m = jnp.max(x, axis=0, keepdims=True)                 # (1, T)
    e = jnp.exp(x - m)
    inv = 1.0 / jnp.sum(e, axis=0, keepdims=True)         # one divide per pixel
    p = e * inv                                            # softmax over classes

    t = target_ref[...]                                   # (1, T) int32
    classes = jax.lax.broadcasted_iota(jnp.int32, p.shape, 0)   # (C, T)
    valid = (t != ignore_index)                           # (1, T) bool
    fg = jnp.where(jnp.logical_and(t == classes, valid), 1.0, 0.0)  # (C, T) f32
    err = jnp.abs(fg - p) * valid.astype(jnp.float32)     # ignored pixels -> 0

    neg_err_ref[...] = -err                               # ascending sort key
    fg_ref[...] = fg.astype(fg_ref.dtype)                 # bf16 (exact 0/1)

    # Per-block per-class foreground count, written to lane 0 of a (C, 128)
    # slot; the wrapper sums the tiny partials (no extra pass over fg in HBM).
    psum = jnp.sum(fg, axis=1, keepdims=True)             # (C, 1)
    lane = jax.lax.broadcasted_iota(jnp.int32, (fg.shape[0], 128), 1)
    gts_ref[...] = jnp.where(lane == 0, psum, 0.0)


# ----------------------------------------------------------------------------
# Kernel 2: blocked Lovasz scan over the sorted axis (sequential grid).
#   Blockwise cumsum via log-step pltpu.roll + masked add, carried prefix.
# ----------------------------------------------------------------------------
def _lovasz_scan_kernel(neg_err_ref, fg_ref, gts_ref, out_ref,
                        prefix_ref, jac0_ref, acc_ref, *, block_n):
    i = pl.program_id(0)

    @pl.when(i == 0)
    def _init():
        prefix_ref[...] = jnp.zeros_like(prefix_ref)
        acc_ref[...] = jnp.zeros_like(acc_ref)

    neg_err = neg_err_ref[...]                            # (C, T) f32, err desc
    fg = fg_ref[...].astype(jnp.float32)                  # cast once per block
    gts = gts_ref[...]                                    # (C, 1) f32

    # Blockwise inclusive cumsum along lanes: log2(T) Hillis-Steele steps
    # (pltpu.roll on the XLU + masked add on the VPU; no MXU, no T x T tri).
    lane = jax.lax.broadcasted_iota(jnp.int32, fg.shape, 1)     # (C, T)
    cum = fg
    d = 1
    while d < block_n:
        shifted = pltpu.roll(cum, shift=d, axis=1)
        cum = cum + jnp.where(lane >= d, shifted, 0.0)
        d *= 2
    cum_fg = prefix_ref[...] + cum                        # (C, T)
    prefix_ref[...] = cum_fg[:, block_n - 1:block_n]      # carry to next block

    # Global 1-based position of every sorted element.
    pos_i = lane + 1 + i * block_n
    pos = pos_i.astype(jnp.float32)

    intersection = gts - cum_fg
    union = gts + (pos - cum_fg)                          # gts + cumsum(1 - fg)
    jaccard = 1.0 - intersection / union                  # (C, T)

    @pl.when(i == 0)
    def _jac0():
        jac0_ref[...] = jaccard[:, 0:1]                   # jaccard at global pos 1

    # jaccard[1:] = jaccard[1:] - jaccard[0]  (reference-module semantics)
    grad = jnp.where(pos_i == 1, jaccard, jaccard - jac0_ref[...])
    # err = -neg_err; fold the sign into the accumulation (no extra negate).
    acc_ref[...] -= jnp.sum(neg_err * grad, axis=-1, keepdims=True)   # (C, 1)

    @pl.when(i == pl.num_programs(0) - 1)
    def _finalize():
        has_fg = (gts > 0.0).astype(jnp.float32)          # classes with foreground
        total = jnp.sum(acc_ref[...] * has_fg, keepdims=True)         # (1, 1)
        count = jnp.sum(has_fg, keepdims=True)                        # (1, 1)
        out_ref[...] = total / jnp.maximum(count, 1.0)    # guard empty-class case


# ----------------------------------------------------------------------------
# Wrapper
# ----------------------------------------------------------------------------
@functools.partial(jax.jit, static_argnames=("num_classes", "ignore_index",
                                             "block_n_softmax", "block_n_scan"))
def lovasz_softmax_loss(logits, target, *, num_classes, ignore_index=-100,
                        block_n_softmax=8192, block_n_scan=8192):
    B, C, H, W = logits.shape
    assert C == num_classes
    assert block_n_softmax % 128 == 0 and block_n_scan % 128 == 0
    HW = H * W

    # Free reshapes only -- no materialized transpose; the class-major (C, N)
    # layout is produced by kernel 1's output BlockSpecs.
    x = logits.reshape(B, C, HW).astype(jnp.float32)
    t = target.reshape(B, 1, HW).astype(jnp.int32)

    # Pad the per-image pixel axis to the softmax tile; padded pixels are
    # "ignored" (err = 0, fg = 0) so they never affect the loss.  (For typical
    # image sizes H*W is a multiple of the tile and this is a no-op.)
    hw_pad = pl.cdiv(HW, block_n_softmax) * block_n_softmax
    if hw_pad > HW:
        x = jnp.pad(x, ((0, 0), (0, 0), (0, hw_pad - HW)))
        t = jnp.pad(t, ((0, 0), (0, 0), (0, hw_pad - HW)),
                    constant_values=ignore_index)
    nb = hw_pad // block_n_softmax          # pixel blocks per image
    n_blocks = B * nb
    N = B * hw_pad

    # ---- kernel 1: softmax + negated errors / fg masks / fg partial counts ----
    neg_err, fg, gts_partial = pl.pallas_call(
        functools.partial(_softmax_err_kernel, ignore_index=ignore_index),
        grid=(B, nb),
        in_specs=[
            pl.BlockSpec((None, C, block_n_softmax), lambda b, i: (b, 0, i)),
            pl.BlockSpec((None, 1, block_n_softmax), lambda b, i: (b, 0, i)),
        ],
        out_specs=(
            pl.BlockSpec((C, block_n_softmax), lambda b, i: (0, b * nb + i)),
            pl.BlockSpec((C, block_n_softmax), lambda b, i: (0, b * nb + i)),
            pl.BlockSpec((C, 128), lambda b, i: (0, b * nb + i)),
        ),
        out_shape=(
            jax.ShapeDtypeStruct((C, N), jnp.float32),               # -err (key)
            jax.ShapeDtypeStruct((C, N), jnp.bfloat16),              # fg (0/1)
            jax.ShapeDtypeStruct((C, n_blocks * 128), jnp.float32),  # fg partials
        ),
        compiler_params=pltpu.CompilerParams(
            dimension_semantics=("parallel", "parallel")),
    )(x, t)

    # Per-class foreground counts from the tiny per-block partials (only lane 0
    # of each 128-wide block slot is non-zero) -- order independent, exact.
    gts = jnp.sum(gts_partial, axis=1, keepdims=True)                # (C, 1)

    # ---- glue: per-class sort.  Ascending on -err == descending on err. ----
    neg_err_s, fg_s = jax.lax.sort((neg_err, fg), dimension=1, num_keys=1)

    # Pad the sorted axis to the scan tile (no-op when block_n_scan divides
    # block_n_softmax); zero err / zero fg at the tail is a no-op for the loss
    # and keeps the ascending key order (all keys are <= 0).
    n2 = pl.cdiv(N, block_n_scan) * block_n_scan
    if n2 > N:
        neg_err_s = jnp.pad(neg_err_s, ((0, 0), (0, n2 - N)))
        fg_s = jnp.pad(fg_s, ((0, 0), (0, n2 - N)))

    # ---- kernel 2: blocked Lovasz scan + dot + mean over classes with fg ----
    loss = pl.pallas_call(
        functools.partial(_lovasz_scan_kernel, block_n=block_n_scan),
        grid=(n2 // block_n_scan,),
        in_specs=[
            pl.BlockSpec((C, block_n_scan), lambda i: (0, i)),
            pl.BlockSpec((C, block_n_scan), lambda i: (0, i)),
            pl.BlockSpec((C, 1), lambda i: (0, 0)),
        ],
        out_specs=pl.BlockSpec((1, 1), lambda i: (0, 0)),
        out_shape=jax.ShapeDtypeStruct((1, 1), jnp.float32),
        scratch_shapes=[
            pltpu.VMEM((C, 1), jnp.float32),   # cumsum prefix carry
            pltpu.VMEM((C, 1), jnp.float32),   # jaccard[0]
            pltpu.VMEM((C, 1), jnp.float32),   # per-class loss accumulator
        ],
        compiler_params=pltpu.CompilerParams(
            dimension_semantics=("arbitrary",)),
    )(neg_err_s, fg_s, gts)

    return loss[0, 0]


# ----------------------------------------------------------------------------
# Pure-numpy reference (mirrors the PyTorch module exactly) for validation
# ----------------------------------------------------------------------------
def _reference(logits, target, num_classes, ignore_index=-100):
    x = np.asarray(logits, dtype=np.float64)
    t = np.asarray(target).reshape(-1)
    x = x - x.max(axis=1, keepdims=True)
    p = np.exp(x) / np.exp(x).sum(axis=1, keepdims=True)
    p = np.transpose(p, (0, 2, 3, 1)).reshape(-1, num_classes)
    mask = t != ignore_index
    p, t = p[mask], t[mask]
    losses = []
    for c in range(num_classes):
        fg = (t == c).astype(np.float64)
        if fg.sum() == 0:
            continue
        errors = np.abs(fg - p[:, c])
        idx = np.argsort(-errors, kind="stable")
        errors, fgs = errors[idx], fg[idx]
        gts = fgs.sum()
        inter = gts - np.cumsum(fgs)
        union = gts + np.cumsum(1.0 - fgs)
        jac = 1.0 - inter / union
        if len(jac) > 1:
            jac[1:] = jac[1:] - jac[0]
        losses.append(float(np.dot(errors, jac)))
    return float(np.mean(losses))


if __name__ == "__main__":
    num_classes = 4
    ignore_index = -100
    B, C, H, W = 2, num_classes, 16, 16

    key = jax.random.PRNGKey(0)
    k_logits, k_target, k_ign = jax.random.split(key, 3)

    logits = jax.random.normal(k_logits, (B, C, H, W), dtype=jnp.float32)
    target = jax.random.randint(k_target, (B, H, W), 0, num_classes, dtype=jnp.int32)
    # sprinkle a few ignore_index pixels to exercise the mask path
    ignore_mask = jax.random.uniform(k_ign, (B, H, W)) < 0.1
    target = jnp.where(ignore_mask, jnp.int32(ignore_index), target)

    ref = _reference(np.asarray(logits), np.asarray(target), num_classes,
                     ignore_index)

    # Small tiles so the toy size (H*W = 256, N = 512) exercises the parallel
    # (batch x pixel-block) softmax grid and the multi-block sequential scan
    # (prefix carry, jaccard[0] propagation, final pl.when).  Production
    # defaults are 8192 / 8192.
    loss = lovasz_softmax_loss(logits, target, num_classes=num_classes,
                               ignore_index=ignore_index,
                               block_n_softmax=128, block_n_scan=128)
    loss = jax.block_until_ready(loss)
    np.testing.assert_allclose(float(loss), ref, rtol=1e-4, atol=1e-5)

    # Second config exercises the per-image padding path (tile > H*W) and a
    # non-dividing scan tile (scan-axis padding path).
    loss2 = lovasz_softmax_loss(logits, target, num_classes=num_classes,
                                ignore_index=ignore_index,
                                block_n_softmax=512, block_n_scan=384)
    loss2 = jax.block_until_ready(loss2)
    np.testing.assert_allclose(float(loss2), ref, rtol=1e-4, atol=1e-5)

    print("KERNEL_OK")
</pallas_src>

<mosaic_0001>
module attributes {stable_mosaic.version = 11 : i64} {
  func.func @_softmax_err_kernel(%arg0: i32, %arg1: i32, %arg2: memref<1x4x128xf32, #tpu.memory_space<vmem>>, %arg3: memref<1x1x128xi32, #tpu.memory_space<vmem>>, %arg4: memref<4x128xf32, #tpu.memory_space<vmem>>, %arg5: memref<4x128xbf16, #tpu.memory_space<vmem>>, %arg6: memref<4x128xf32, #tpu.memory_space<vmem>>) attributes {dimension_semantics = [#tpu.dimension_semantics<parallel>, #tpu.dimension_semantics<parallel>], iteration_bounds = array<i64: 2, 2>, scalar_prefetch = 0 : i64, scratch_operands = 0 : i64, tpu.core_type = #tpu.core_type<tc>, window_params = [{transform_indices = @transform_0, window_bounds = array<i64: 1, 4, 128>}, {transform_indices = @transform_1, window_bounds = array<i64: 1, 1, 128>}, {transform_indices = @transform_2, window_bounds = array<i64: 4, 128>}, {transform_indices = @transform_3, window_bounds = array<i64: 4, 128>}, {transform_indices = @transform_4, window_bounds = array<i64: 4, 128>}]} {
    %c0 = arith.constant 0 : index
    %c0_0 = arith.constant 0 : index
    %c0_1 = arith.constant 0 : index
    %0 = vector.load %arg2[%c0, %c0_0, %c0_1] : memref<1x4x128xf32, #tpu.memory_space<vmem>>, vector<1x4x128xf32>
    %1 = vector.shape_cast %0 : vector<1x4x128xf32> to vector<4x128xf32>
    %cst = arith.constant dense<0xFF800000> : vector<128xf32>
    %2 = vector.multi_reduction <maximumf>, %1, %cst [0] : vector<4x128xf32> to vector<128xf32>
    %3 = vector.shape_cast %2 : vector<128xf32> to vector<1x128xf32>
    %4 = vector.broadcast %3 : vector<1x128xf32> to vector<4x128xf32>
    %5 = arith.subf %1, %4 : vector<4x128xf32>
    %6 = math.exp %5 : vector<4x128xf32>
    %cst_2 = arith.constant dense<0.000000e+00> : vector<128xf32>
    %7 = vector.multi_reduction <add>, %6, %cst_2 [0] : vector<4x128xf32> to vector<128xf32>
    %8 = vector.shape_cast %7 : vector<128xf32> to vector<1x128xf32>
    %cst_3 = arith.constant 1.000000e+00 : f32
    %9 = vector.broadcast %cst_3 : f32 to vector<1x128xf32>
    %10 = arith.divf %9, %8 : vector<1x128xf32>
    %11 = vector.broadcast %10 : vector<1x128xf32> to vector<4x128xf32>
    %12 = arith.mulf %6, %11 : vector<4x128xf32>
    %c0_4 = arith.constant 0 : index
    %c0_5 = arith.constant 0 : index
    %c0_6 = arith.constant 0 : index
    %13 = vector.load %arg3[%c0_4, %c0_5, %c0_6] : memref<1x1x128xi32, #tpu.memory_space<vmem>>, vector<1x1x128xi32>
    %14 = vector.shape_cast %13 : vector<1x1x128xi32> to vector<1x128xi32>
    %15 = tpu.iota {dimensions = array<i32: 0>} : vector<4x128xi32>
    %c-100_i32 = arith.constant -100 : i32
    %16 = vector.broadcast %c-100_i32 : i32 to vector<1x128xi32>
    %17 = arith.cmpi ne, %14, %16 : vector<1x128xi32>
    %18 = vector.broadcast %14 : vector<1x128xi32> to vector<4x128xi32>
    %19 = arith.cmpi eq, %18, %15 : vector<4x128xi32>
    %20 = vector.broadcast %17 : vector<1x128xi1> to vector<4x128xi1>
    %21 = arith.andi %19, %20 : vector<4x128xi1>
    %cst_7 = arith.constant 1.000000e+00 : f32
    %cst_8 = arith.constant 0.000000e+00 : f32
    %22 = vector.broadcast %cst_7 : f32 to vector<4x128xf32>
    %23 = vector.broadcast %cst_8 : f32 to vector<4x128xf32>
    %24 = arith.select %21, %22, %23 : vector<4x128xi1>, vector<4x128xf32>
    %25 = arith.subf %24, %12 : vector<4x128xf32>
    %26 = math.absf %25 : vector<4x128xf32>
    %27 = arith.extui %17 : vector<1x128xi1> to vector<1x128xi32>
    %28 = arith.sitofp %27 : vector<1x128xi32> to vector<1x128xf32>
    %29 = vector.broadcast %28 : vector<1x128xf32> to vector<4x128xf32>
    %30 = arith.mulf %26, %29 : vector<4x128xf32>
    %cst_9 = arith.constant 0.000000e+00 : f32
    %31 = vector.broadcast %cst_9 : f32 to vector<4x128xf32>
    %32 = arith.subf %31, %30 : vector<4x128xf32>
    %c0_10 = arith.constant 0 : index
    %c0_11 = arith.constant 0 : index
    %33 = vector.load %arg4[%c0_10, %c0_11] : memref<4x128xf32, #tpu.memory_space<vmem>>, vector<4x128xf32>
    tpu.vector_store %arg4[%c0_10, %c0_11], %32 {strides = array<i32>} : memref<4x128xf32, #tpu.memory_space<vmem>>, vector<4x128xf32>,
    %34 = arith.truncf %24 : vector<4x128xf32> to vector<4x128xbf16>
    %c0_12 = arith.constant 0 : index
    %c0_13 = arith.constant 0 : index
    %35 = vector.load %arg5[%c0_12, %c0_13] : memref<4x128xbf16, #tpu.memory_space<vmem>>, vector<4x128xbf16>
    tpu.vector_store %arg5[%c0_12, %c0_13], %34 {strides = array<i32>} : memref<4x128xbf16, #tpu.memory_space<vmem>>, vector<4x128xbf16>,
    %cst_14 = arith.constant dense<0.000000e+00> : vector<4xf32>
    %36 = vector.multi_reduction <add>, %24, %cst_14 [1] : vector<4x128xf32> to vector<4xf32>
    %37 = vector.shape_cast %36 : vector<4xf32> to vector<4x1xf32>
    %38 = tpu.iota {dimensions = array<i32: 1>} : vector<4x128xi32>
    %c0_i32 = arith.constant 0 : i32
    %39 = vector.broadcast %c0_i32 : i32 to vector<4x128xi32>
    %40 = arith.cmpi eq, %38, %39 : vector<4x128xi32>
    %cst_15 = arith.constant 0.000000e+00 : f32
    %41 = vector.shape_cast %37 : vector<4x1xf32> to vector<4x1xf32>
    %42 = vector.broadcast %41 : vector<4x1xf32> to vector<4x128xf32>
    %43 = vector.broadcast %cst_15 : f32 to vector<4x128xf32>
    %44 = arith.select %40, %42, %43 : vector<4x128xi1>, vector<4x128xf32>
    %c0_16 = arith.constant 0 : index
    %c0_17 = arith.constant 0 : index
    %45 = vector.load %arg6[%c0_16, %c0_17] : memref<4x128xf32, #tpu.memory_space<vmem>>, vector<4x128xf32>
    tpu.vector_store %arg6[%c0_16, %c0_17], %44 {strides = array<i32>} : memref<4x128xf32, #tpu.memory_space<vmem>>, vector<4x128xf32>,
    return
  }
  func.func @transform_0(%arg0: i32, %arg1: i32) -> (i32, i32, i32) {
    %c0_i32 = arith.constant 0 : i32
    %c0_i32_0 = arith.constant 0 : i32
    return %arg0, %c0_i32, %arg1 : i32, i32, i32
  }
  func.func @transform_1(%arg0: i32, %arg1: i32) -> (i32, i32, i32) {
    %c0_i32 = arith.constant 0 : i32
    %c0_i32_0 = arith.constant 0 : i32
    return %arg0, %c0_i32, %arg1 : i32, i32, i32
  }
  func.func @transform_2(%arg0: i32, %arg1: i32) -> (i32, i32) {
    %c2_i32 = arith.constant 2 : i32
    %0 = arith.muli %arg0, %c2_i32 : i32
    %1 = arith.addi %0, %arg1 : i32
    %c0_i32 = arith.constant 0 : i32
    %c0_i32_0 = arith.constant 0 : i32
    return %c0_i32, %1 : i32, i32
  }
  func.func @transform_3(%arg0: i32, %arg1: i32) -> (i32, i32) {
    %c2_i32 = arith.constant 2 : i32
    %0 = arith.muli %arg0, %c2_i32 : i32
    %1 = arith.addi %0, %arg1 : i32
    %c0_i32 = arith.constant 0 : i32
    %c0_i32_0 = arith.constant 0 : i32
    return %c0_i32, %1 : i32, i32
  }
  func.func @transform_4(%arg0: i32, %arg1: i32) -> (i32, i32) {
    %c2_i32 = arith.constant 2 : i32
    %0 = arith.muli %arg0, %c2_i32 : i32
    %1 = arith.addi %0, %arg1 : i32
    %c0_i32 = arith.constant 0 : i32
    %c0_i32_0 = arith.constant 0 : i32
    return %c0_i32, %1 : i32, i32
  }
}

module attributes {stable_mosaic.version = 11 : i64} {
  func.func @_lovasz_scan_kernel(%arg0: i32, %arg1: memref<4x128xf32, #tpu.memory_space<vmem>>, %arg2: memref<4x128xbf16, #tpu.memory_space<vmem>>, %arg3: memref<4x1xf32, #tpu.memory_space<vmem>>, %arg4: memref<1x1xf32, #tpu.memory_space<vmem>>, %arg5: memref<4x1xf32, #tpu.memory_space<vmem>>, %arg6: memref<4x1xf32, #tpu.memory_space<vmem>>, %arg7: memref<4x1xf32, #tpu.memory_space<vmem>>) attributes {dimension_semantics = [#tpu.dimension_semantics<arbitrary>], iteration_bounds = array<i64: 4>, scalar_prefetch = 0 : i64, scratch_operands = 3 : i64, tpu.core_type = #tpu.core_type<tc>, window_params = [{transform_indices = @transform_0, window_bounds = array<i64: 4, 128>}, {transform_indices = @transform_1, window_bounds = array<i64: 4, 128>}, {pipeline_mode = #tpu.pipeline_mode<synchronous>, transform_indices = @transform_2, window_bounds = array<i64: 4, 1>}, {pipeline_mode = #tpu.pipeline_mode<synchronous>, transform_indices = @transform_3, window_bounds = array<i64: 1, 1>}]} {
    %c0_i32 = arith.constant 0 : i32
    %0 = arith.cmpi eq, %arg0, %c0_i32 : i32
    %1 = arith.extui %0 : i1 to i32
    %c0_i32_0 = arith.constant 0 : i32
    %2 = arith.cmpi ne, %1, %c0_i32_0 : i32
    scf.if %2 {
      %cst_36 = arith.constant 0.000000e+00 : f32
      %87 = vector.broadcast %cst_36 : f32 to vector<4x1xf32>
      %c0_37 = arith.constant 0 : index
      %c0_38 = arith.constant 0 : index
      %88 = vector.load %arg5[%c0_37, %c0_38] : memref<4x1xf32, #tpu.memory_space<vmem>>, vector<4x1xf32>
      tpu.vector_store %arg5[%c0_37, %c0_38], %87 {strides = array<i32>} : memref<4x1xf32, #tpu.memory_space<vmem>>, vector<4x1xf32>,
      %cst_39 = arith.constant 0.000000e+00 : f32
      %89 = vector.broadcast %cst_39 : f32 to vector<4x1xf32>
      %c0_40 = arith.constant 0 : index
      %c0_41 = arith.constant 0 : index
      %90 = vector.load %arg7[%c0_40, %c0_41] : memref<4x1xf32, #tpu.memory_space<vmem>>, vector<4x1xf32>
      tpu.vector_store %arg7[%c0_40, %c0_41], %89 {strides = array<i32>} : memref<4x1xf32, #tpu.memory_space<vmem>>, vector<4x1xf32>,
    } else {
    }
    %c0 = arith.constant 0 : index
    %c0_1 = arith.constant 0 : index
    %3 = vector.load %arg1[%c0, %c0_1] : memref<4x128xf32, #tpu.memory_space<vmem>>, vector<4x128xf32>
    %c0_2 = arith.constant 0 : index
    %c0_3 = arith.constant 0 : index
    %4 = vector.load %arg2[%c0_2, %c0_3] : memref<4x128xbf16, #tpu.memory_space<vmem>>, vector<4x128xbf16>
    %5 = arith.extf %4 : vector<4x128xbf16> to vector<4x128xf32>
    %c0_4 = arith.constant 0 : index
    %c0_5 = arith.constant 0 : index
    %6 = vector.load %arg3[%c0_4, %c0_5] : memref<4x1xf32, #tpu.memory_space<vmem>>, vector<4x1xf32>
    %7 = tpu.iota {dimensions = array<i32: 1>} : vector<4x128xi32>
    %c1_i32 = arith.constant 1 : i32
    %8 = tpu.dynamic_rotate %5 by %c1_i32 dim 1 : vector<4x128xf32>, i32 -> vector<4x128xf32>
    %c1_i32_6 = arith.constant 1 : i32
    %9 = vector.broadcast %c1_i32_6 : i32 to vector<4x128xi32>
    %10 = arith.cmpi sge, %7, %9 : vector<4x128xi32>
    %cst = arith.constant 0.000000e+00 : f32
    %11 = vector.broadcast %cst : f32 to vector<4x128xf32>
    %12 = arith.select %10, %8, %11 : vector<4x128xi1>, vector<4x128xf32>
    %13 = arith.addf %5, %12 : vector<4x128xf32>
    %c2_i32 = arith.constant 2 : i32
    %14 = tpu.dynamic_rotate %13 by %c2_i32 dim 1 : vector<4x128xf32>, i32 -> vector<4x128xf32>
    %c2_i32_7 = arith.constant 2 : i32
    %15 = vector.broadcast %c2_i32_7 : i32 to vector<4x128xi32>
    %16 = arith.cmpi sge, %7, %15 : vector<4x128xi32>
    %cst_8 = arith.constant 0.000000e+00 : f32
    %17 = vector.broadcast %cst_8 : f32 to vector<4x128xf32>
    %18 = arith.select %16, %14, %17 : vector<4x128xi1>, vector<4x128xf32>
    %19 = arith.addf %13, %18 : vector<4x128xf32>
    %c4_i32 = arith.constant 4 : i32
    %20 = tpu.dynamic_rotate %19 by %c4_i32 dim 1 : vector<4x128xf32>, i32 -> vector<4x128xf32>
    %c4_i32_9 = arith.constant 4 : i32
    %21 = vector.broadcast %c4_i32_9 : i32 to vector<4x128xi32>
    %22 = arith.cmpi sge, %7, %21 : vector<4x128xi32>
    %cst_10 = arith.constant 0.000000e+00 : f32
    %23 = vector.broadcast %cst_10 : f32 to vector<4x128xf32>
    %24 = arith.select %22, %20, %23 : vector<4x128xi1>, vector<4x128xf32>
    %25 = arith.addf %19, %24 : vector<4x128xf32>
    %c8_i32 = arith.constant 8 : i32
    %26 = tpu.dynamic_rotate %25 by %c8_i32 dim 1 : vector<4x128xf32>, i32 -> vector<4x128xf32>
    %c8_i32_11 = arith.constant 8 : i32
    %27 = vector.broadcast %c8_i32_11 : i32 to vector<4x128xi32>
    %28 = arith.cmpi sge, %7, %27 : vector<4x128xi32>
    %cst_12 = arith.constant 0.000000e+00 : f32
    %29 = vector.broadcast %cst_12 : f32 to vector<4x128xf32>
    %30 = arith.select %28, %26, %29 : vector<4x128xi1>, vector<4x128xf32>
    %31 = arith.addf %25, %30 : vector<4x128xf32>
    %c16_i32 = arith.constant 16 : i32
    %32 = tpu.dynamic_rotate %31 by %c16_i32 dim 1 : vector<4x128xf32>, i32 -> vector<4x128xf32>
    %c16_i32_13 = arith.constant 16 : i32
    %33 = vector.broadcast %c16_i32_13 : i32 to vector<4x128xi32>
    %34 = arith.cmpi sge, %7, %33 : vector<4x128xi32>
    %cst_14 = arith.constant 0.000000e+00 : f32
    %35 = vector.broadcast %cst_14 : f32 to vector<4x128xf32>
    %36 = arith.select %34, %32, %35 : vector<4x128xi1>, vector<4x128xf32>
    %37 = arith.addf %31, %36 : vector<4x128xf32>
    %c32_i32 = arith.constant 32 : i32
    %38 = tpu.dynamic_rotate %37 by %c32_i32 dim 1 : vector<4x128xf32>, i32 -> vector<4x128xf32>
    %c32_i32_15 = arith.constant 32 : i32
    %39 = vector.broadcast %c32_i32_15 : i32 to vector<4x128xi32>
    %40 = arith.cmpi sge, %7, %39 : vector<4x128xi32>
    %cst_16 = arith.constant 0.000000e+00 : f32
    %41 = vector.broadcast %cst_16 : f32 to vector<4x128xf32>
    %42 = arith.select %40, %38, %41 : vector<4x128xi1>, vector<4x128xf32>
    %43 = arith.addf %37, %42 : vector<4x128xf32>
    %c64_i32 = arith.constant 64 : i32
    %44 = tpu.dynamic_rotate %43 by %c64_i32 dim 1 : vector<4x128xf32>, i32 -> vector<4x128xf32>
    %c64_i32_17 = arith.constant 64 : i32
    %45 = vector.broadcast %c64_i32_17 : i32 to vector<4x128xi32>
    %46 = arith.cmpi sge, %7, %45 : vector<4x128xi32>
    %cst_18 = arith.constant 0.000000e+00 : f32
    %47 = vector.broadcast %cst_18 : f32 to vector<4x128xf32>
    %48 = arith.select %46, %44, %47 : vector<4x128xi1>, vector<4x128xf32>
    %49 = arith.addf %43, %48 : vector<4x128xf32>
    %c0_19 = arith.constant 0 : index
    %c0_20 = arith.constant 0 : index
    %50 = vector.load %arg5[%c0_19, %c0_20] : memref<4x1xf32, #tpu.memory_space<vmem>>, vector<4x1xf32>
    %51 = vector.broadcast %50 : vector<4x1xf32> to vector<4x128xf32>
    %52 = arith.addf %51, %49 : vector<4x128xf32>
    %53 = vector.extract_strided_slice %52 {offsets = [0, 127], sizes = [4, 1], strides = [1, 1]} : vector<4x128xf32> to vector<4x1xf32>
    %c0_21 = arith.constant 0 : index
    %c0_22 = arith.constant 0 : index
    %54 = vector.load %arg5[%c0_21, %c0_22] : memref<4x1xf32, #tpu.memory_space<vmem>>, vector<4x1xf32>
    tpu.vector_store %arg5[%c0_21, %c0_22], %53 {strides = array<i32>} : memref<4x1xf32, #tpu.memory_space<vmem>>, vector<4x1xf32>,
    %c1_i32_23 = arith.constant 1 : i32
    %55 = vector.broadcast %c1_i32_23 : i32 to vector<4x128xi32>
    %56 = arith.addi %7, %55 : vector<4x128xi32>
    %c128_i32 = arith.constant 128 : i32
    %57 = arith.muli %arg0, %c128_i32 : i32
    %58 = vector.broadcast %57 : i32 to vector<4x128xi32>
    %59 = arith.addi %56, %58 : vector<4x128xi32>
    %60 = arith.sitofp %59 : vector<4x128xi32> to vector<4x128xf32>
    %61 = vector.broadcast %6 : vector<4x1xf32> to vector<4x128xf32>
    %62 = arith.subf %61, %52 : vector<4x128xf32>
    %63 = arith.subf %60, %52 : vector<4x128xf32>
    %64 = vector.broadcast %6 : vector<4x1xf32> to vector<4x128xf32>
    %65 = arith.addf %64, %63 : vector<4x128xf32>
    %66 = arith.divf %62, %65 : vector<4x128xf32>
    %cst_24 = arith.constant 1.000000e+00 : f32
    %67 = vector.broadcast %cst_24 : f32 to vector<4x128xf32>
    %68 = arith.subf %67, %66 : vector<4x128xf32>
    %c0_i32_25 = arith.constant 0 : i32
    %69 = arith.cmpi eq, %arg0, %c0_i32_25 : i32
    %70 = arith.extui %69 : i1 to i32
    %c0_i32_26 = arith.constant 0 : i32
    %71 = arith.cmpi ne, %70, %c0_i32_26 : i32
    scf.if %71 {
      %87 = vector.extract_strided_slice %68 {offsets = [0, 0], sizes = [4, 1], strides = [1, 1]} : vector<4x128xf32> to vector<4x1xf32>
      %c0_36 = arith.constant 0 : index
      %c0_37 = arith.constant 0 : index
      %88 = vector.load %arg6[%c0_36, %c0_37] : memref<4x1xf32, #tpu.memory_space<vmem>>, vector<4x1xf32>
      tpu.vector_store %arg6[%c0_36, %c0_37], %87 {strides = array<i32>} : memref<4x1xf32, #tpu.memory_space<vmem>>, vector<4x1xf32>,
    } else {
    }
    %c1_i32_27 = arith.constant 1 : i32
    %72 = vector.broadcast %c1_i32_27 : i32 to vector<4x128xi32>
    %73 = arith.cmpi eq, %59, %72 : vector<4x128xi32>
    %c0_28 = arith.constant 0 : index
    %c0_29 = arith.constant 0 : index
    %74 = vector.load %arg6[%c0_28, %c0_29] : memref<4x1xf32, #tpu.memory_space<vmem>>, vector<4x1xf32>
    %75 = vector.broadcast %74 : vector<4x1xf32> to vector<4x128xf32>
    %76 = arith.subf %68, %75 : vector<4x128xf32>
    %77 = arith.select %73, %68, %76 : vector<4x128xi1>, vector<4x128xf32>
    %c0_30 = arith.constant 0 : index
    %c0_31 = arith.constant 0 : index
    %78 = vector.load %arg7[%c0_30, %c0_31] : memref<4x1xf32, #tpu.memory_space<vmem>>, vector<4x1xf32>
    %79 = arith.mulf %3, %77 : vector<4x128xf32>
    %cst_32 = arith.constant dense<0.000000e+00> : vector<4xf32>
    %80 = vector.multi_reduction <add>, %79, %cst_32 [1] : vector<4x128xf32> to vector<4xf32>
    %81 = vector.shape_cast %80 : vector<4xf32> to vector<4x1xf32>
    %82 = arith.subf %78, %81 : vector<4x1xf32>
    %c0_33 = arith.constant 0 : index
    %c0_34 = arith.constant 0 : index
    %83 = vector.load %arg7[%c0_33, %c0_34] : memref<4x1xf32, #tpu.memory_space<vmem>>, vector<4x1xf32>
    tpu.vector_store %arg7[%c0_33, %c0_34], %82 {strides = array<i32>} : memref<4x1xf32, #tpu.memory_space<vmem>>, vector<4x1xf32>,
    %c3_i32 = arith.constant 3 : i32
    %84 = arith.cmpi eq, %arg0, %c3_i32 : i32
    %85 = arith.extui %84 : i1 to i32
    %c0_i32_35 = arith.constant 0 : i32
    %86 = arith.cmpi ne, %85, %c0_i32_35 : i32
    scf.if %86 {
      %cst_36 = arith.constant 0.000000e+00 : f32
      %87 = vector.broadcast %cst_36 : f32 to vector<4x1xf32>
      %88 = arith.cmpf ogt, %6, %87 : vector<4x1xf32>
      %89 = arith.extui %88 : vector<4x1xi1> to vector<4x1xi32>
      %90 = arith.sitofp %89 : vector<4x1xi32> to vector<4x1xf32>
      %c0_37 = arith.constant 0 : index
      %c0_38 = arith.constant 0 : index
      %91 = vector.load %arg7[%c0_37, %c0_38] : memref<4x1xf32, #tpu.memory_space<vmem>>, vector<4x1xf32>
      %92 = arith.mulf %91, %90 : vector<4x1xf32>
      %93 = vector.shape_cast %92 : vector<4x1xf32> to vector<1x4x1xf32>
      %cst_39 = arith.constant dense<0.000000e+00> : vector<1xf32>
      %94 = vector.multi_reduction <add>, %93, %cst_39 [1, 2] : vector<1x4x1xf32> to vector<1xf32>
      %95 = vector.shape_cast %94 : vector<1xf32> to vector<1x1x1xf32>
      %96 = vector.extract %95[0, 0, 0] : f32 from vector<1x1x1xf32>
      %97 = vector.broadcast %96 : f32 to vector<1x1xf32>
      %98 = vector.shape_cast %90 : vector<4x1xf32> to vector<1x4x1xf32>
      %cst_40 = arith.constant dense<0.000000e+00> : vector<1xf32>
      %99 = vector.multi_reduction <add>, %98, %cst_40 [1, 2] : vector<1x4x1xf32> to vector<1xf32>
      %100 = vector.shape_cast %99 : vector<1xf32> to vector<1x1x1xf32>
      %101 = vector.extract %100[0, 0, 0] : f32 from vector<1x1x1xf32>
      %102 = vector.broadcast %101 : f32 to vector<1x1xf32>
      %cst_41 = arith.constant 1.000000e+00 : f32
      %103 = vector.broadcast %cst_41 : f32 to vector<1x1xf32>
      %104 = arith.maximumf %102, %103 : vector<1x1xf32>
      %105 = arith.divf %97, %104 : vector<1x1xf32>
      %c0_42 = arith.constant 0 : index
      %c0_43 = arith.constant 0 : index
      %106 = vector.load %arg4[%c0_42, %c0_43] : memref<1x1xf32, #tpu.memory_space<vmem>>, vector<1x1xf32>
      tpu.vector_store %arg4[%c0_42, %c0_43], %105 {strides = array<i32>} : memref<1x1xf32, #tpu.memory_space<vmem>>, vector<1x1xf32>,
    } else {
    }
    return
  }
  func.func @transform_0(%arg0: i32) -> (i32, i32) {
    %c0_i32 = arith.constant 0 : i32
    %c0_i32_0 = arith.constant 0 : i32
    return %c0_i32, %arg0 : i32, i32
  }
  func.func @transform_1(%arg0: i32) -> (i32, i32) {
    %c0_i32 = arith.constant 0 : i32
    %c0_i32_0 = arith.constant 0 : i32
    return %c0_i32, %arg0 : i32, i32
  }
  func.func @transform_2(%arg0: i32) -> (i32, i32) {
    %c0_i32 = arith.constant 0 : i32
    %c0_i32_0 = arith.constant 0 : i32
    %c0_i32_1 = arith.constant 0 : i32
    return %c0_i32, %c0_i32_0 : i32, i32
  }
  func.func @transform_3(%arg0: i32) -> (i32, i32) {
    %c0_i32 = arith.constant 0 : i32
    %c0_i32_0 = arith.constant 0 : i32
    %c0_i32_1 = arith.constant 0 : i32
    return %c0_i32, %c0_i32_0 : i32, i32
  }
}

</mosaic_0001>

<bundles_post_ra>
// kernel: lovasz_softmax_loss.2
= control target key start
LH: loop header
LB: loop body
LE: loop exit
PB: predicated region body
PF: predicated region fallthrough
CT: control target
= control target key end

     0   :  { %s661_s15 = smov 0   ;;  %s663_s16 = smov 0   ;;  %s730_s0 = inlined_call_operand.vmem [shape: f32[2,4,256], index: 0, kind: input, shape index: {}]   ;;  %s731_s1 = inlined_call_operand.vmem [shape: s32[2,1,256], index: 1, kind: input, shape index: {}]   ;;  %s732_s2 = inlined_call_operand.vmem [shape: f32[4,512], index: 2, kind: output, shape index: {0}]   ;;  %s733_s3 = inlined_call_operand.vmem [shape: bf16[4,512], index: 3, kind: output, shape index: {1}]   ;;  %s734_s4 = inlined_call_operand.vmem [shape: f32[4,512], index: 4, kind: output, shape index: {2}]  }
   0x1   :  { %s665_s17 = smov 0   ;;  %s667_s18 = smov 0  }
   0x2   :  { %s669_s19 = smov 0  }
   0x3 LB: > { %s24_s20 = sadd.s32 1, %s624_s17  ;;  %s27_s21 = sadd.s32 1, %s628_s18  ;;  %s632_s19 = sphi %s669_s19, %s15_s19   ;;  %s628_s18 = sphi %s667_s18, %s738_s18   ;;  %s624_s17 = sphi %s665_s17, %s737_s17   ;;  %s620_s16 = sphi %s663_s16, %s736_s16   ;;  %s616_s15 = sphi %s661_s15, %s735_s15  }
   0x4   : > { %p25_p0 = scmp.ge.s32.totalorder %s24_s20, 2  ;;  %p535_p1 = scmp.ge.s32.totalorder %s632_s19, 1 }
   0x5   : > { %p210_p2 = scmp.lt.s32.totalorder %s632_s19, 5 }
   0x6   : > { %s740_s20 = smov (%p25_p0, %s24_s20), 0  ;;  %s742_s21 = smov (!%p25_p0, %s27_s21), %s628_s18 }
   0x7   : > { %p211_p3 = pnand %p535_p1, %p210_p2  ;;  %p29_p4 = scmp.ge.s32.totalorder %s742_s21, 2 }
   0x8   : > { %p259_p5 = scmp.lt.s32.totalorder (!%p211_p3), %s620_s16, 1  ;;  %p261_p6 = scmp.lt.s32.totalorder (!%p211_p3), %s616_s15, 1  ;;  %v321_v0 = vlaneseq (!%p211_p3)  ;;  %vm299_vm0 = vcmask (!%p211_p3), 1043456   ;;  %v634_v7 = vmov (!%p211_p3), 0   ;;  %v635_v13 = vmov (!%p211_p3), 0.0  }
   0x9   : > { %s744_s21 = smov (%p29_p4, %s742_s21), 0  ;;  %214 = sbr.rel (%p211_p3) target bundleno = 174 (0xae), region = 28 }
   0xa   : > { %s539_s22 = sshll.u32 (!%p211_p3), %s620_s16, 1  ;;  %v322_v1 = vshrl.u32 (!%p211_p3), %v321_v0, 7  ;;  %v355_v38 = vand.u32 (!%p211_p3), 127, %v321_v0 }
   0xb   : > { %s275_s25 = sadd.s32 (!%p211_p3), %s616_s15, %s539_s22 }
   0xc   : > { %v326_v2 = vsub.s32 (!%p211_p3), 0, %v322_v1  ;;  %p276_p7 = scmp.lt.s32.totalorder (!%p211_p3), %s275_s25, 3  ;;  %vm356_vm5 = vcmp.eq.s32.totalorder (!%p211_p3), %v355_v38, 0 }
  0x10   : > { %s746_s16 = smov (!%p259_p5, %s620_s16), 1  ;;  %s748_s25 = smov (!%p276_p7, %s275_s25), 3 }
  0x11   : > { %s262_s23 = scalar_select %p261_p6, %s616_s15, 1 }
  0x12   : > { %s536_s24 = sshll.u32 %s746_s16, 1  ;;  %s542_s8 = sshll.u32 %s748_s25, 1 }
  0x13   : > { %s264_s26 = sadd.s32 %s536_s24, %s262_s23  ;;  %s287_s11 = scalar_lea.vmem %s733_s3, %s542_s8 }
  0x14   : > { %s537_s27 = sshll.u32 %s264_s26, 2  ;;  %s273_s30 = scalar_lea.vmem %s731_s1, %s264_s26 }
  0x15   : > { %s266_s7 = scalar_lea.vmem %s730_s0, %s537_s27  ;;  %v320_v3 = vld [vmem:[%s273_s30] sm:$0x1]  ;;  %s540_s12 = sshll.u32 %s748_s25, 2 }
  0x16   : > { %v298_v4 = vld [vmem:[%s266_s7] sm:$0xf]  ;;  %vm323_vm1 = vcmp.ne.s32.totalorder %v320_v3, 4294967196  ;;  %v327_v5 = vrot.slane %v320_v3, %v326_v2  ;;  %s279_s15 = scalar_lea.vmem %s732_s2, %s540_s12  ;;  %s295_s23 = scalar_lea.vmem %s734_s4, %s540_s12 }
  0x17   : > { %v300_v6 = vsel %vm299_vm0, %v298_v4, -inf  ;;  %v329_v8 = vsel %vm323_vm1, 1, %v634_v7  ;;  %v545_v31 = vsel %vm323_vm1, 1.0, %v635_v13 }
  0x18   : > { %v301_v9 = vrot.slane %v300_v6, 4  ;;  %vm328_vm2 = vcmp.eq.s32.totalorder %v327_v5, %v322_v1  ;;  %v333_v10 = vrot.slane %v329_v8, %v326_v2  ;;  %v344_v34 = vrot.slane %v545_v31, %v326_v2 }
  0x1a   : > { %v302_v11 = vmax.f32 %v300_v6, %v301_v9  ;;  %vm334_vm3 = vcmp.eq.s32.totalorder %v333_v10, 1 }
  0x1b   : > { %vm335_vm4 = vmand %vm328_vm2, %vm334_vm3 }
  0x1c   : > { %v303_v12 = vrot.slane %v302_v11, 2  ;;  %v336_v14 = vsel %vm335_vm4, 1.0, %v635_v13 }
  0x1d   : > { %v349_v15 = vpack.c.bf16 %v336_v14, %v336_v14  ;;  %v351_v16 = vsel %vm299_vm0, %v336_v14, 0.0 }
  0x1e   : > { %v304_v17 = vmax.f32 %v302_v11, %v303_v12  ;;  %352 = vadd.xlane.f32.xlu0 %v351_v16 }
  0x1f   : > { %350 = vst [vmem:[%s287_s11] sm:$0x3] %v349_v15 }
  0x20   : > { %v305_v18 = vrot.slane %v304_v17, 1 }
  0x22   : > { %v306_v19 = vmax.f32 %v304_v17, %v305_v18 }
  0x24   : > { %v307_v20 = vsub.f32 %v298_v4, %v306_v19 }
  0x26   : > { %v308_v21 = vmul.f32 1.442695, %v307_v20 }
  0x28   : > { %590 = vpow2.f32 %v308_v21 }
  0x32   : > { %v591_v22 = vpop.eup %590 }
  0x33   : > { %v310_v23 = vsel %vm299_vm0, %v591_v22, 0.0 }
  0x34   : > { %v311_v24 = vrot.slane %v310_v23, 4 }
  0x36   : > { %v312_v25 = vadd.f32 %v311_v24, %v310_v23 }
  0x38   : > { %v313_v26 = vrot.slane %v312_v25, 2 }
  0x3a   : > { %v314_v27 = vadd.f32 %v313_v26, %v312_v25 }
  0x3c   : > { %v315_v28 = vrot.slane %v314_v27, 1 }
  0x3e   : > { %v316_v29 = vadd.f32 %v315_v28, %v314_v27 }
  0x40   : > { %592 = vrcp.f32 %v316_v29 }
  0x4a   : > { %v593_v30 = vpop.eup %592 }
  0x4b   : > { %v319_v32 = vmul.f32 %v593_v30, %v591_v22 }
  0x4d   : > { %v337_v33 = vsub.f32 %v336_v14, %v319_v32 }
  0x4f   : > { %v338_v35 = vand.u32 2147483647, %v337_v33 }
  0x51   : > { %v346_v36 = vmul.f32 %v344_v34, %v338_v35 }
  0x53   : > { %v347_v37 = vsub.f32 0.0, %v346_v36 }
  0x55   : > { %348 = vst [vmem:[%s279_s15] sm:$0xf] %v347_v37 }
  0xab   : > { %v353_v39 = vpop.xlane.xlu0 %352 }
  0xac   : > { %v357_v40 = vsel %vm356_vm5, %v353_v39, 0.0 }
  0xad   : > { %358 = vst [vmem:[%s295_s23] sm:$0xf] %v357_v40 }
  0xae PF: > { %s15_s19 = sadd.s32 1, %s632_s19   ;;  %s735_s15 = smov %s624_s17 }
  0xaf   : > { %p12_p8 = scmp.ge.s32.totalorder %s15_s19, 6   ;;  %s736_s16 = smov %s628_s18 }
  0xb0   : > { %s737_s17 = smov %s740_s20  ;;  %s738_s18 = smov %s744_s21 }
  0xb1   :  { %14 = sbr.rel (!%p12_p8) target bundleno = 3 (0x3), region = 85 }

// kernel: lovasz_softmax_loss.3
= control target key start
LH: loop header
LB: loop body
LE: loop exit
PB: predicated region body
PF: predicated region fallthrough
CT: control target
= control target key end

     0   :  { %8 = vsyncpa [#allocation6], 0  ;;  %s483_s12 = smov 0   ;;  %s547_s0 = inlined_call_operand.vmem [shape: f32[4,512], index: 0, kind: input, shape index: {}]   ;;  %s548_s1 = inlined_call_operand.vmem [shape: bf16[4,512], index: 1, kind: input, shape index: {}]   ;;  %s549_s2 = inlined_call_operand.vmem [shape: f32[4,1], index: 2, kind: input, shape index: {}]   ;;  %s550_s3 = inlined_call_operand.hbm [shape: f32[1,1], index: 3, kind: output, shape index: {}]  }
   0x1 LB: > { %s489_s13 = sadd.s32 4294967295, %s450_s12   ;;  %p366_p0 = scmp.ge.s32.totalorder %s450_s12, 1  ;;  %s450_s12 = sphi %s483_s12, %s14_s12  }
   0x2   : > { %p141_p1 = scmp.lt.s32.totalorder %s450_s12, 5 }
   0x4   : > { %p142_p2 = pnand %p366_p0, %p141_p1 }
   0x5   : > { %p163_p3 = scmp.lt.s32.totalorder (!%p142_p2), %s489_s13, 3  ;;  %p369_p4 = scmp.ne.s32.totalorder (!%p142_p2), %s489_s13, 0 }
   0x6   : > { %145 = sbr.rel (%p142_p2) target bundleno = 1508 (0x5e4), region = 32 }
   0xd   : > { %s164_s14 = scalar_select %p163_p3, %s489_s13, 3 }
   0xe   : > { %174 = sbr.rel (%p369_p4) target bundleno = 21 (0x15), region = 36  ;;  %vm175_vm0 = vcmask (!%p369_p4), 3072   ;;  %v452_v0 = vmov (!%p369_p4), 0.0  }
   0xf   : > { %s367_s15 = sshll.u32 %s164_s14, 2  ;;  %s368_s16 = sshll.u32 %s164_s14, 1  ;;  %176 = vst.msk [vmem:[#allocation2] sm:$0xf] (!%p369_p4), %vm175_vm0, %v452_v0  ;;  %177 = vst.msk [vmem:[#allocation4] sm:$0xf] (!%p369_p4), %vm175_vm0, %v452_v0 }
  0x10   : > { %s498_s19 = scalar_lea.vmem %s547_s0, %s367_s15  ;;  %s170_s22 = scalar_lea.vmem %s548_s1, %s368_s16 }
  0x15 PF: > { %v179_v1 = vld [vmem:[%s170_s22] sm:$0x3]  ;;  %s453_s23 = smov 1   ;;  %v182_v3 = vlaneseq  ;;  %s454_s24 = smov 2   ;;  %v457_v14 = vmov 0   ;;  %vm230_vm8 = vcmask 3072  }
  0x16   : > { %v180_v2 = vunpack.c.l.bf16 %v179_v1  ;;  %s455_s25 = smov 4   ;;  %s456_s26 = smov 8   ;;  %407 = vset.pattern.permute.xlu0 %v457_v14  ;;  %408 = vset.pattern.permute.xlu1 %v457_v14  ;;  %v219_v18 = vld [vmem:[#allocation2] sm:$0xf] }
  0x17   : > { %v183_v4 = vand.u32 127, %v182_v3  ;;  %s458_s27 = smov 16   ;;  %s459_s28 = smov 32   ;;  %v181_v25 = vld [vmem:[%s549_s2] sm:$0xf] }
  0x18   : > { %184 = vrot.lane.b32.xlu0 %v180_v2, %s453_s23  ;;  %s460_s29 = smov 64   ;;  %v178_v26 = vld [vmem:[%s498_s19] sm:$0xf]  ;;  %s370_s5 = sshll.u32 %s489_s13, 7 }
  0x19   : > { %vm186_vm1 = vcmp.ge.s32.totalorder %v183_v4, 1  ;;  %vm191_vm2 = vcmp.ge.s32.totalorder %v183_v4, 2  ;;  %vm196_vm3 = vcmp.ge.s32.totalorder %v183_v4, 4  ;;  %vm201_vm4 = vcmp.ge.s32.totalorder %v183_v4, 8 }
  0x1a   : > { %vm206_vm5 = vcmp.ge.s32.totalorder %v183_v4, 16  ;;  %vm211_vm6 = vcmp.ge.s32.totalorder %v183_v4, 32  ;;  %vm216_vm7 = vcmp.ge.s32.totalorder %v183_v4, 64  ;;  %v232_v32 = vadd.s32 1, %v183_v4 }
  0x1b   : > { %v234_v33 = vstv %s370_s5 }
  0x1c   : > { %v235_v34 = vadd.s32 %v234_v33, %v232_v32 }
  0x1e   : > { %v236_v35 = vcvt.s32.f32 %v235_v34 }
  0x8a   : > { %v185_v5 = vpop.permute.xlu0 %184 }
  0x8b   : > { %v187_v6 = vsel %vm186_vm1, %v185_v5, 0.0 }
  0x8c   : > { %v188_v7 = vadd.f32 %v187_v6, %v180_v2 }
  0x8e   : > { %189 = vrot.lane.b32.xlu0 %v188_v7, %s454_s24 }
 0x100   : > { %v190_v8 = vpop.permute.xlu0 %189 }
 0x101   : > { %v192_v9 = vsel %vm191_vm2, %v190_v8, 0.0 }
 0x102   : > { %v193_v10 = vadd.f32 %v192_v9, %v188_v7 }
 0x104   : > { %194 = vrot.lane.b32.xlu1 %v193_v10, %s455_s25 }
 0x176   : > { %v195_v11 = vpop.permute.xlu1 %194 }
 0x177   : > { %v197_v12 = vsel %vm196_vm3, %v195_v11, 0.0 }
 0x178   : > { %v198_v13 = vadd.f32 %v197_v12, %v193_v10 }
 0x17a   : > { %199 = vrot.lane.b32.xlu1 %v198_v13, %s456_s26 }
 0x1ec   : > { %v200_v15 = vpop.permute.xlu1 %199 }
 0x1ed   : > { %v202_v16 = vsel %vm201_vm4, %v200_v15, 0.0 }
 0x1ee   : > { %v203_v17 = vadd.f32 %v202_v16, %v198_v13 }
 0x1f0   : > { %204 = vrot.lane.b32.xlu0 %v203_v17, %s458_s27 }
 0x1f4   : > { %222 = vperm.xlu0 %407, %v219_v18  }
 0x262   : > { %v205_v19 = vpop.permute.xlu0 %204 }
 0x263   : > { %v207_v20 = vsel %vm206_vm5, %v205_v19, 0.0 }
 0x264   : > { %v208_v21 = vadd.f32 %v207_v20, %v203_v17 }
 0x266   : > { %209 = vrot.lane.b32.xlu1 %v208_v21, %s459_s28 }
 0x273   : > { %v223_v29 = vpop.permute.xlu0 %222 }
 0x2d8   : > { %v210_v22 = vpop.permute.xlu1 %209 }
 0x2d9   : > { %v212_v23 = vsel %vm211_vm6, %v210_v22, 0.0 }
 0x2da   : > { %v213_v24 = vadd.f32 %v212_v23, %v208_v21 }
 0x2dc   : > { %214 = vrot.lane.b32.xlu1 %v213_v24, %s460_s29 }
 0x2e0   : > { %239 = vperm.xlu1 %408, %v181_v25  }
 0x34e   : > { %v215_v27 = vpop.permute.xlu1 %214 }
 0x34f   : > { %v217_v28 = vsel %vm216_vm7, %v215_v27, 0.0 }
 0x350   : > { %v218_v30 = vadd.f32 %v217_v28, %v213_v24 }
 0x352   : > { %v225_v31 = vadd.f32 %v223_v29, %v218_v30 }
 0x354   : > { %227 = vrot.lane.b32.xlu0 %v225_v31, %s453_s23  ;;  %v243_v36 = vsub.f32 %v236_v35, %v225_v31 }
 0x35f   : > { %v240_v37 = vpop.permute.xlu1 %239 }
 0x360   : > { %v244_v38 = vadd.f32 %v243_v36, %v240_v37  ;;  %v242_v39 = vsub.f32 %v240_v37, %v225_v31 }
 0x362   : > { %409 = vrcp.f32 %v244_v38 }
 0x36c   : > { %v410_v40 = vpop.eup %409 }
 0x36d   : > { %v246_v41 = vmul.f32 %v410_v40, %v242_v39 }
 0x36f   : > { %v247_v42 = vsub.f32 1.0, %v246_v41 }
 0x371   : > { %251 = vst.msk [vmem:[#allocation3] sm:$0xf] (!%p369_p4), %vm230_vm8, %v247_v42 }
 0x3c1   : > { %250 = sbr.rel (%p369_p4) target bundleno = 968 (0x3c8), region = 40 }
 0x3c6   : > { %v228_v43 = vpop.permute.xlu0 %227 }
 0x3c7   : > { %231 = vst.msk [vmem:[#allocation2] sm:$0xf] %vm230_vm8, %v228_v43 }
 0x3c8 PF: > { %411 = vset.pattern.permute.xlu0 %v457_v14  ;;  %v253_v44 = vld [vmem:[#allocation3] sm:$0xf]  ;;  %vm252_vm9 = vcmp.eq.s32.totalorder %v235_v34, 1  ;;  %vm263_vm10 = vcmask 1043456   ;;  %v261_v50 = vld [vmem:[#allocation4] sm:$0xf] }
 0x3c9   : > { %256 = vperm.xlu0 %411, %v253_v44   ;;  %p372_p5 = scmp.ne.s32.totalorder %s489_s13, 3 }
 0x3ca   : > { %vm273_vm11 = vcmp.gt.f32.partialorder (!%p372_p5), %v181_v25, 0.0  ;;  %v461_v54 = vmov (!%p372_p5), 0.0   ;;  %vm303_vm12 = vcmask (!%p372_p5), 0  }
 0x3cb   : > { %v373_v55 = vsel (!%p372_p5), %vm273_vm11, 1.0, %v461_v54 }
 0x3cc   : > { %v289_v58 = vsel (!%p372_p5), %vm230_vm8, %v373_v55, 0.0 }
 0x448   : > { %v257_v45 = vpop.permute.xlu0 %256 }
 0x449   : > { %v259_v46 = vsub.f32 %v247_v42, %v257_v45 }
 0x44b   : > { %v260_v47 = vsel %vm252_vm9, %v247_v42, %v259_v46 }
 0x44c   : > { %v262_v48 = vmul.f32 %v260_v47, %v178_v26 }
 0x44e   : > { %v264_v49 = vsel %vm263_vm10, %v262_v48, 0.0 }
 0x44f   : > { %265 = vadd.xlane.f32.xlu0 %v264_v49 }
 0x4d9   : > { %272 = sbr.rel (%p372_p5) target bundleno = 1483 (0x5cb), region = 44 }
 0x4dc   : > { %v266_v51 = vpop.xlane.xlu0 %265 }
 0x4dd   : > { %v267_v52 = vsub.f32 %v261_v50, %v266_v51 }
 0x4df   : > { %268 = vst.msk [vmem:[#allocation4] sm:$0xf] %vm230_vm8, %v267_v52 }
 0x4e6   : > { %v276_v53 = vld [vmem:[#allocation4] sm:$0xf] }
 0x4e7   : > { %v277_v56 = vmul.f32 %v373_v55, %v276_v53 }
 0x4e9   : > { %v278_v57 = vsel %vm230_vm8, %v277_v56, 0.0 }
 0x4ea   : > { %279 = vadd.xlane.f32.xlu0 %v278_v57 }
 0x4ee   : > { %290 = vadd.xlane.f32.xlu0 %v289_v58 }
 0x577   : > { %v280_v59 = vpop.xlane.xlu0 %279 }
 0x578   : > { %v281_v60 = vrot.slane %v280_v59, 4 }
 0x57a   : > { %v282_v61 = vadd.f32 %v281_v60, %v280_v59 }
 0x57b   : > { %v291_v62 = vpop.xlane.xlu0 %290 }
 0x57c   : > { %v283_v63 = vrot.slane %v282_v61, 2  ;;  %v292_v0 = vrot.slane %v291_v62, 4 }
 0x57e   : > { %v293_v1 = vadd.f32 %v292_v0, %v291_v62  ;;  %v284_v2 = vadd.f32 %v283_v63, %v282_v61 }
 0x580   : > { %v294_v3 = vrot.slane %v293_v1, 2  ;;  %v285_v4 = vrot.slane %v284_v2, 1 }
 0x582   : > { %v295_v5 = vadd.f32 %v294_v3, %v293_v1  ;;  %v286_v6 = vadd.f32 %v285_v4, %v284_v2 }
 0x584   : > { %378 = vpush %v286_v6  ;;  %v296_v7 = vrot.slane %v295_v5, 1 }
 0x586   : > { %v297_v8 = vadd.f32 %v296_v7, %v295_v5 }
 0x588   : > { %380 = vpush %v297_v8 }
 0x5b5   : > { %s379_s6 = spop %378 }
 0x5b6   : > { %v288_v12 = vstv %s379_s6 }
 0x5b9   : > { %s381_s7 = spop %380 }
 0x5ba   : > { %v299_v9 = vstv %s381_s7 }
 0x5bb   : > { %v300_v10 = vmax.f32 %v299_v9, 1.0 }
 0x5bd   : > { %412 = vrcp.f32 %v300_v10 }
 0x5c7   : > { %v413_v11 = vpop.eup %412 }
 0x5c8   : > { %v302_v13 = vmul.f32 %v413_v11, %v288_v12 }
 0x5ca   : > { %304 = vst.msk [vmem:[#allocation5] sm:$0x1] %vm303_vm12, %v302_v13 }
 0x5cb PF: > { %p386_p6 = scmp.eq.s32.totalorder %s489_s13, 3  ;;  %s462_s8 = smov [#allocation5]  }
 0x5cc   : > { %s312_s9 = sshll.u32 %s462_s8, 4  ;;  %s313_s9 = int_to_ptr.vmem [resolvable:$true] %s312_s9 }
 0x5cd   : > { %s414_s10 = scalar_lea.vmem %s313_s9, 16  ;;  %s420_s11 = scalar_lea.vmem %s313_s9, 32 }
 0x5ce   : > { %p415_p7 = scmp.ne.s32.totalorder %s313_s9, %s414_s10  ;;  %p421_p10 = scmp.lt.s32.totalorder %s313_s9, %s313_s9 }
 0x5cf   : > { %p422_p11 = scmp.lt.s32.totalorder %s420_s11, %s414_s10 }
 0x5d0   : > { %p416_p8 = pnand %p415_p7, %p386_p6 }
 0x5d1   : > { %p423_p12 = por %p422_p11, %p421_p10 }
 0x5d2   : > { %p417_p9 = pneg %p416_p8 }
 0x5d4   : > { %p424_p13 = pnand %p423_p12, %p417_p9 }
 0x5d6   : > { %427 = shalt.err (!%p424_p13)
}
 0x5d7   : > { %s428_s16 = scalar_lea.hbm %s550_s3, 16 }
 0x5d8   : > { %p429_p0 = scmp.ne.s32.totalorder %s550_s3, %s428_s16  ;;  %p434_p3 = scmp.lt.u32.totalorder %s428_s16, %s550_s3 }
 0x5da   : > { %p430_p1 = pnand %p429_p0, %p386_p6 }
 0x5dc   : > { %p431_p2 = pneg %p430_p1 }
 0x5de   : > { %p436_p4 = pnand %p434_p3, %p431_p2 }
 0x5e0   : > { %439 = shalt.err (!%p436_p4)
}
 0x5e1   : > { %383 = dma.vmem_to_hbm [thread:$0]  (%p386_p6), %s313_s9, 16, %s550_s3, [#allocation6]  }
 0x5e2   : > { %445 = dma.done.wait (%p386_p6), [#allocation6], 16  }
 0x5e3   : > { %447 = vsyncadd (%p386_p6), [#allocation6], 4294967280 }
 0x5e4 PF: > { %s14_s12 = sadd.s32 1, %s450_s12  }
 0x5e5   : > { %p11_p5 = scmp.ge.s32.totalorder %s14_s12, 6  }
 0x5e7   :  { %13 = sbr.rel (!%p11_p5) target bundleno = 1 (0x1), region = 74 }
 0x5ee   :  { %325 = vsyncpa [#allocation6], 1 }
 0x5ef   :  { %327 = vsyncpa [#allocation6 + $0x1], 1 }

</bundles_post_ra>
